<compile_context>
chip_gen: v5e
topology: v5e:2x2
jax: 0.10.0
libtpu: 0.0.40
codegen_flags: <defaults>
</compile_context>

<pallas_src>
import functools

import jax
import jax.numpy as jnp
from jax.experimental import pallas as pl
from jax.experimental.pallas import tpu as pltpu


def _round_up(a: int, b: int) -> int:
    return (a + b - 1) // b * b


def _pick_tile(dim_pad: int, align: int, cap: int, prefer: int | None = None) -> int:
    """Largest multiple of `align` that divides dim_pad and is <= cap.

    If `prefer` is given (e.g. 256 to match the 256-wide MXU on v6e/v7x),
    multiples of `prefer` are tried first.
    """
    cap = max(align, min(cap, dim_pad))
    cap -= cap % align
    if prefer is not None:
        t = cap
        while t >= align:
            if t % prefer == 0 and dim_pad % t == 0:
                return t
            t -= align
    t = cap
    while t >= align:
        if dim_pad % t == 0:
            return t
        t -= align
    return align  # align always divides dim_pad (dim_pad = round_up(dim, align))


def _device_budgets():
    """Per-generation VMEM / tile budgets (conservative when unknown)."""
    try:
        kind = jax.devices()[0].device_kind.lower()
    except Exception:  # pragma: no cover
        kind = ""
    if "v7" in kind:
        # 64 MiB physical VMEM per TC: leave headroom for compiler scratch.
        return dict(vmem_limit=48 << 20, w_resident_cap=12 << 20,
                    tm_cap=512, tn_cap=256, tk_cap=512)
    if "v6" in kind:
        # 128 MiB physical: allow big tiles, 256-aligned N for the 256x256 MXU.
        return dict(vmem_limit=96 << 20, w_resident_cap=28 << 20,
                    tm_cap=512, tn_cap=512, tk_cap=1024)
    if "v5 lite" in kind or "v5e" in kind or "v5litepod" in kind:
        # Most memory-bound generation: prioritize reuse; 128-wide MXU is fine.
        return dict(vmem_limit=64 << 20, w_resident_cap=24 << 20,
                    tm_cap=512, tn_cap=256, tk_cap=512)
    # Unknown (v4/v5p/interpret): conservative budget that fits everywhere.
    return dict(vmem_limit=48 << 20, w_resident_cap=12 << 20,
                tm_cap=512, tn_cap=256, tk_cap=512)


# --------------------------------------------------------------------------
# Kernels
# --------------------------------------------------------------------------
def _wres_kernel(x_ref, w_ref, b_ref, o_ref, *, precision):
    """W-resident path: grid = (M tiles,). W block index is constant, so the
    weight is DMA'd into VMEM once and reused for every row tile."""
    acc = jnp.dot(x_ref[...], w_ref[...],
                  preferred_element_type=jnp.float32, precision=precision)
    o_ref[...] = (acc + b_ref[...].astype(jnp.float32)).astype(o_ref.dtype)


def _kgrid_kernel_f32out(x_ref, w_ref, b_ref, o_ref, *, precision):
    """(M, N, K) grid, f32 output: accumulate directly into the resident
    output block (no scratch, no final copy). Bias seeds the accumulator."""
    k = pl.program_id(2)

    @pl.when(k == 0)
    def _():
        o_ref[...] = jnp.broadcast_to(b_ref[...], o_ref.shape).astype(o_ref.dtype)

    o_ref[...] += jnp.dot(x_ref[...], w_ref[...],
                          preferred_element_type=jnp.float32, precision=precision)


def _kgrid_kernel_acc(x_ref, w_ref, b_ref, o_ref, acc_ref, *, precision):
    """(M, N, K) grid, narrow output dtype: f32 VMEM accumulator, bias added
    and cast exactly once at the last K step."""
    k = pl.program_id(2)

    @pl.when(k == 0)
    def _():
        acc_ref[...] = jnp.zeros_like(acc_ref)

    acc_ref[...] += jnp.dot(x_ref[...], w_ref[...],
                            preferred_element_type=jnp.float32, precision=precision)

    @pl.when(k == pl.num_programs(2) - 1)
    def _():
        o_ref[...] = (acc_ref[...] + b_ref[...].astype(jnp.float32)).astype(o_ref.dtype)


# --------------------------------------------------------------------------
# Wrapper
# --------------------------------------------------------------------------
def custom_linear3(x, weight, bias, *, force_pallas=False, force_w_resident=None,
                   precision=None):
    """y = x @ weight + bias with a tiled, pipelined Pallas TPU kernel.

    precision: optional jax.lax.Precision for the MXU dot (pass HIGHEST for
    fp32-exact parity with torch.matmul at ~3-6x MXU cost).
    """
    in_channel, out_channel = weight.shape
    assert x.shape[-1] == in_channel, "Input's last dim must match in_channel"

    lead_shape = x.shape[:-1]
    m = 1
    for d in lead_shape:
        m *= d
    k, n = in_channel, out_channel
    out_dtype = jnp.promote_types(x.dtype, weight.dtype)

    # Tiny problems: fused XLA beats pad + pallas launch + slice on every gen.
    if not force_pallas and (m < 8 or n < 128 or m * n * k < 8 * 128 * 128):
        return (jnp.matmul(x, weight, precision=precision) + bias).astype(out_dtype)

    budgets = _device_budgets()
    vmem_budget = int(budgets["vmem_limit"] * 0.75)

    xb = jnp.dtype(x.dtype).itemsize
    wb = jnp.dtype(weight.dtype).itemsize
    ob = jnp.dtype(out_dtype).itemsize

    x2d = x.reshape(m, k)

    # Alignment: lane dim multiples of 128; sublane 8 for 32-bit, 16/32 packed.
    m_align = max(8, 32 // min(xb, ob))
    m_pad = _round_up(m, m_align)
    n_pad = _round_up(n, 128)
    k_pad = _round_up(k, 128)

    w_bytes = k_pad * n_pad * wb
    w_resident = (w_bytes <= budgets["w_resident_cap"]) if force_w_resident is None \
        else bool(force_w_resident)

    tm = tn = tk = None
    if w_resident:
        # Grid (M tiles,); W + bias fully resident, x/out streamed once each.
        def wres_footprint(tm_):
            return (2 * w_bytes + 2 * tm_ * k_pad * xb
                    + 2 * tm_ * n_pad * ob + 2 * n_pad * 4)

        cap = budgets["tm_cap"]
        tm = _pick_tile(m_pad, m_align, cap)
        while tm > m_align and wres_footprint(tm) > vmem_budget:
            cap = tm - m_align
            tm = _pick_tile(m_pad, m_align, cap)
        if wres_footprint(tm) > vmem_budget:
            w_resident = False  # weight too big after all -> K-grid path
        else:
            # Megacore: guarantee >= 2 parallel grid steps when m allows.
            if m_pad // tm < 2 and m_pad // m_align >= 2:
                tm = _pick_tile(m_pad, m_align, max(m_align, m_pad // 2))

    # Zero-padding along K contributes nothing to the dot product; padded
    # M rows / N cols are sliced off afterwards.  Divisor-aware tiles make
    # these pass-throughs (no copy) for aligned shapes.
    x_p = x2d if (m_pad, k_pad) == (m, k) else \
        jnp.pad(x2d, ((0, m_pad - m), (0, k_pad - k)))
    w_p = weight if (k_pad, n_pad) == (k, n) else \
        jnp.pad(weight, ((0, k_pad - k), (0, n_pad - n)))
    b_p = bias if n_pad == n else jnp.pad(bias, (0, n_pad - n))
    b_p = b_p.reshape(1, n_pad)

    if w_resident:
        grid = (m_pad // tm,)
        cost = pl.CostEstimate(
            flops=2 * m_pad * n_pad * k_pad,
            bytes_accessed=(xb * m_pad * k_pad + wb * k_pad * n_pad
                            + 4 * n_pad + ob * m_pad * n_pad),
            transcendentals=0,
        )
        out2d = pl.pallas_call(
            functools.partial(_wres_kernel, precision=precision),
            out_shape=jax.ShapeDtypeStruct((m_pad, n_pad), out_dtype),
            grid_spec=pltpu.PrefetchScalarGridSpec(
                num_scalar_prefetch=0,
                grid=grid,
                in_specs=[
                    pl.BlockSpec((tm, k_pad), lambda i: (i, 0)),       # x row tile
                    pl.BlockSpec((k_pad, n_pad), lambda i: (0, 0)),    # W: fetched once
                    pl.BlockSpec((1, n_pad), lambda i: (0, 0)),        # bias: fetched once
                ],
                out_specs=pl.BlockSpec((tm, n_pad), lambda i: (i, 0)),
            ),
            compiler_params=pltpu.CompilerParams(
                dimension_semantics=("parallel",),
                vmem_limit_bytes=budgets["vmem_limit"],
            ),
            cost_estimate=cost,
        )(x_p, w_p, b_p)
    else:
        # General (M, N, K) grid, K innermost ("arbitrary"), M/N parallel.
        tm = _pick_tile(m_pad, m_align, budgets["tm_cap"])
        tn = _pick_tile(n_pad, 128, budgets["tn_cap"], prefer=256)
        tk = _pick_tile(k_pad, 128, budgets["tk_cap"])

        use_acc = out_dtype != jnp.float32

        def kfoot(tm_, tn_, tk_):
            acc = tm_ * tn_ * 4 if use_acc else 0
            return (2 * tm_ * tk_ * xb + 2 * tk_ * tn_ * wb
                    + 2 * tm_ * tn_ * ob + acc + 2 * tn_ * 4)

        while kfoot(tm, tn, tk) > vmem_budget and tk > 128:
            tk = _pick_tile(k_pad, 128, tk - 128)
        while kfoot(tm, tn, tk) > vmem_budget and tn > 128:
            tn = _pick_tile(n_pad, 128, tn - 128)
        while kfoot(tm, tn, tk) > vmem_budget and tm > m_align:
            tm = _pick_tile(m_pad, m_align, tm - m_align)

        # Megacore: make sure the parallel axes have >= 2 total steps.
        if (m_pad // tm) * (n_pad // tn) < 2:
            if m_pad // m_align >= 2:
                tm = _pick_tile(m_pad, m_align, max(m_align, m_pad // 2))
            elif n_pad // 128 >= 2:
                tn = _pick_tile(n_pad, 128, max(128, n_pad // 2))

        grid = (m_pad // tm, n_pad // tn, k_pad // tk)
        m_tiles, n_tiles, _ = grid

        if use_acc:
            kernel = functools.partial(_kgrid_kernel_acc, precision=precision)
            scratch = [pltpu.VMEM((tm, tn), jnp.float32)]
        else:
            kernel = functools.partial(_kgrid_kernel_f32out, precision=precision)
            scratch = []

        cost = pl.CostEstimate(
            flops=2 * m_pad * n_pad * k_pad,
            # x restreamed per N tile, W restreamed per M tile.
            bytes_accessed=(xb * m_pad * k_pad * n_tiles
                            + wb * k_pad * n_pad * m_tiles
                            + 4 * n_pad + ob * m_pad * n_pad),
            transcendentals=0,
        )
        out2d = pl.pallas_call(
            kernel,
            out_shape=jax.ShapeDtypeStruct((m_pad, n_pad), out_dtype),
            grid_spec=pltpu.PrefetchScalarGridSpec(
                num_scalar_prefetch=0,
                grid=grid,
                in_specs=[
                    pl.BlockSpec((tm, tk), lambda i, j, kk: (i, kk)),   # x tile
                    pl.BlockSpec((tk, tn), lambda i, j, kk: (kk, j)),   # W tile
                    pl.BlockSpec((1, tn), lambda i, j, kk: (0, j)),     # bias tile
                ],
                out_specs=pl.BlockSpec((tm, tn), lambda i, j, kk: (i, j)),
                scratch_shapes=scratch,
            ),
            compiler_params=pltpu.CompilerParams(
                dimension_semantics=("parallel", "parallel", "arbitrary"),
                vmem_limit_bytes=budgets["vmem_limit"],
            ),
            cost_estimate=cost,
        )(x_p, w_p, b_p)

    if (m_pad, n_pad) != (m, n):
        out2d = out2d[:m, :n]
    return out2d.reshape(*lead_shape, n)


if __name__ == "__main__":
    key = jax.random.PRNGKey(0)
    (kx1, kw1, kb1, kx2, kw2, kb2, kx3, kw3, kb3) = jax.random.split(key, 9)

    # --- 1) Small shapes consistent with the module: batch=2, seq=8, in=32, out=16.
    #        Forced through the Pallas path (W-resident kernel) so the kernel is
    #        exercised even though the default would use the tiny-problem fallback.
    in1, out1 = 32, 16
    w1 = jax.random.uniform(kw1, (in1, out1), dtype=jnp.float32, minval=-1.0, maxval=1.0)
    b1 = jax.random.uniform(kb1, (out1,), dtype=jnp.float32, minval=-1.0, maxval=1.0)
    x1 = jax.random.normal(kx1, (2, 8, in1), dtype=jnp.float32)

    y1 = jax.block_until_ready(custom_linear3(x1, w1, b1, force_pallas=True))
    y1_ref = jnp.matmul(x1, w1) + b1
    assert y1.shape == (2, 8, out1)
    assert jnp.allclose(y1, y1_ref, atol=1e-4, rtol=1e-4)

    # --- 2) Medium, pad-free shapes: exercises the W-resident path with real tiling
    #        (n=384 -> tn=384, no N padding; x/W pass through without jnp.pad).
    in2, out2 = 1024, 384
    w2 = jax.random.uniform(kw2, (in2, out2), dtype=jnp.float32, minval=-1.0, maxval=1.0)
    b2 = jax.random.uniform(kb2, (out2,), dtype=jnp.float32, minval=-1.0, maxval=1.0)
    x2 = jax.random.normal(kx2, (4, 128, in2), dtype=jnp.float32)

    y2 = jax.block_until_ready(custom_linear3(x2, w2, b2))
    y2_ref = jnp.matmul(x2, w2) + b2
    assert y2.shape == (4, 128, out2)
    assert jnp.allclose(y2, y2_ref, atol=1e-3, rtol=1e-3)

    # --- 3) Force the (M, N, K) grid + direct-into-output f32 accumulation path,
    #        with HIGHEST precision to match an fp32 reference tightly.
    in3, out3 = 1536, 768
    w3 = jax.random.uniform(kw3, (in3, out3), dtype=jnp.float32, minval=-1.0, maxval=1.0)
    b3 = jax.random.uniform(kb3, (out3,), dtype=jnp.float32, minval=-1.0, maxval=1.0)
    x3 = jax.random.normal(kx3, (4, 256, in3), dtype=jnp.float32)

    y3 = jax.block_until_ready(
        custom_linear3(x3, w3, b3, force_w_resident=False,
                       precision=jax.lax.Precision.HIGHEST))
    y3_ref = jnp.matmul(x3, w3, precision=jax.lax.Precision.HIGHEST) + b3
    assert y3.shape == (4, 256, out3)
    assert jnp.allclose(y3, y3_ref, atol=1e-3, rtol=1e-3)

    print("KERNEL_OK")
</pallas_src>

<mosaic_0001>
module attributes {stable_mosaic.version = 11 : i64} {
  func.func @_wres_kernel(%arg0: i32, %arg1: memref<8x128xf32, #tpu.memory_space<vmem>>, %arg2: memref<128x128xf32, #tpu.memory_space<vmem>>, %arg3: memref<1x128xf32, #tpu.memory_space<vmem>>, %arg4: memref<8x128xf32, #tpu.memory_space<vmem>>) attributes {dimension_semantics = [#tpu.dimension_semantics<parallel>], iteration_bounds = array<i64: 2>, scalar_prefetch = 0 : i64, scratch_operands = 0 : i64, tpu.core_type = #tpu.core_type<tc>, window_params = [{transform_indices = @transform_0, window_bounds = array<i64: 8, 128>}, {pipeline_mode = #tpu.pipeline_mode<synchronous>, transform_indices = @transform_1, window_bounds = array<i64: 128, 128>}, {pipeline_mode = #tpu.pipeline_mode<synchronous>, transform_indices = @transform_2, window_bounds = array<i64: 1, 128>}, {transform_indices = @transform_3, window_bounds = array<i64: 8, 128>}]} {
    %c0 = arith.constant 0 : index
    %c0_0 = arith.constant 0 : index
    %0 = vector.load %arg1[%c0, %c0_0] : memref<8x128xf32, #tpu.memory_space<vmem>>, vector<8x128xf32>
    %c0_1 = arith.constant 0 : index
    %c0_2 = arith.constant 0 : index
    %1 = vector.load %arg2[%c0_1, %c0_2] : memref<128x128xf32, #tpu.memory_space<vmem>>, vector<128x128xf32>
    %cst = arith.constant dense<0.000000e+00> : vector<8x128xf32>
    %2 = tpu.matmul %0, %1, %cst {dimension_numbers = #tpu.dot_dimension_numbers<[1], [0], [0], [1], [0, 0, 1, 1], [], []>} : vector<8x128xf32>, vector<128x128xf32>, vector<8x128xf32> -> vector<8x128xf32>
    %c0_3 = arith.constant 0 : index
    %c0_4 = arith.constant 0 : index
    %3 = vector.load %arg3[%c0_3, %c0_4] : memref<1x128xf32, #tpu.memory_space<vmem>>, vector<1x128xf32>
    %4 = vector.broadcast %3 : vector<1x128xf32> to vector<8x128xf32>
    %5 = arith.addf %2, %4 : vector<8x128xf32>
    %c0_5 = arith.constant 0 : index
    %c0_6 = arith.constant 0 : index
    %6 = vector.load %arg4[%c0_5, %c0_6] : memref<8x128xf32, #tpu.memory_space<vmem>>, vector<8x128xf32>
    tpu.vector_store %arg4[%c0_5, %c0_6], %5 {strides = array<i32>} : memref<8x128xf32, #tpu.memory_space<vmem>>, vector<8x128xf32>,
    return
  }
  func.func @transform_0(%arg0: i32) -> (i32, i32) {
    %c0_i32 = arith.constant 0 : i32
    %c0_i32_0 = arith.constant 0 : i32
    return %arg0, %c0_i32 : i32, i32
  }
  func.func @transform_1(%arg0: i32) -> (i32, i32) {
    %c0_i32 = arith.constant 0 : i32
    %c0_i32_0 = arith.constant 0 : i32
    %c0_i32_1 = arith.constant 0 : i32
    return %c0_i32, %c0_i32_0 : i32, i32
  }
  func.func @transform_2(%arg0: i32) -> (i32, i32) {
    %c0_i32 = arith.constant 0 : i32
    %c0_i32_0 = arith.constant 0 : i32
    %c0_i32_1 = arith.constant 0 : i32
    return %c0_i32, %c0_i32_0 : i32, i32
  }
  func.func @transform_3(%arg0: i32) -> (i32, i32) {
    %c0_i32 = arith.constant 0 : i32
    %c0_i32_0 = arith.constant 0 : i32
    return %arg0, %c0_i32 : i32, i32
  }
}

</mosaic_0001>

<bundles_post_ra>
// kernel: tpu_custom_call.1
= control target key start
LH: loop header
LB: loop body
LE: loop exit
PB: predicated region body
PF: predicated region fallthrough
CT: control target
= control target key end

     0   :  { %8 = vsyncpa [#allocation3], 0  ;;  %s718_s0 = inlined_call_operand.hbm [shape: f32[16,128], index: 0, kind: input, shape index: {}]   ;;  %s719_s1 = inlined_call_operand.hbm [shape: f32[128,128], index: 1, kind: input, shape index: {}]   ;;  %s720_s2 = inlined_call_operand.vmem [shape: f32[1,128], index: 2, kind: input, shape index: {}]   ;;  %s721_s3 = inlined_call_operand.hbm [shape: f32[16,128], index: 3, kind: output, shape index: {}]  }
   0x1   :  { %10 = vsyncpa [#allocation3 + $0x1], 0 }
   0x2   :  { %11 = vsyncpa [#allocation6], 0 }
   0x3   :  { %12 = vsyncpa [#allocation4], 0 }
   0x4   :  { %14 = vsyncpa [#allocation4 + $0x1], 0  ;;  %s572_s12 = smov 0   ;;  %s574_s13 = smov 0  }
   0x5   :  { %s576_s14 = smov 0   ;;  %s578_s15 = smov 0  }
   0x6 LB: > { %s130_s18 = sshll.u32 %s719_s1, 4  ;;  %s596_s19 = sadd.s32 4294967295, %s547_s15   ;;  %s547_s15 = sphi %s578_s15, %s731_s15   ;;  %s543_s14 = sphi %s576_s14, %s730_s14   ;;  %s539_s13 = sphi %s574_s13, %s729_s13   ;;  %s535_s12 = sphi %s572_s12, %s728_s12   ;;  %s131_s18 = int_to_ptr.hbm [resolvable:$true] %s130_s18 }
   0x7   : > { %p344_p0 = scmp.ge.s32.totalorder %s547_s15, 1  ;;  %p41_p1 = scmp.eq.s32.totalorder %s596_s19, 0 }
   0x8   : > { %p119_p2 = scmp.lt.s32.totalorder %s547_s15, 3  ;;  %s549_s21 = smov [#allocation5]  }
   0x9   : > { %s132_s22 = sshll.u32 %s549_s21, 4  ;;  %s550_s23 = smov 128   ;;  %s133_s22 = int_to_ptr.vmem [resolvable:$true] %s132_s22 }
   0xa   : > { %p601_p3 = pnand %p344_p0, %p119_p2  ;;  %s551_s24 = smov 8  }
   0xb   : > { %s343_s25 = sadd.s32 4294967294, %s547_s15   ;;  %s612_s26 = sadd.s32 1, %s547_s15  }
   0xc   : > { %p365_p4 = pneg %p601_p3  ;;  %s27_s27 = sadd.s32 1, %s543_s14 }
   0xd   : > { %s24_s28 = ssub.s32 %s547_s15, %s612_s26  ;;  %p34_p7 = scmp.ne.s32.totalorder %s543_s14, %s539_s13 }
   0xe   : > { %p366_p6 = pnand %p365_p4, %p41_p1  ;;  %p25_p8 = scmp.eq.s32.totalorder %s24_s28, 0 }
   0xf   : > { %p35_p9 = scmp.eq.s32.totalorder %s547_s15, 0  ;;  %p40_p10 = scmp.ne.s32.totalorder %s539_s13, %s535_s12 }
  0x10   : > { %368 = dma.hbm_to_vmem [thread:$0]  (!%p366_p6), %s131_s18, 2048, %s133_s22, [#allocation6], %s550_s23, %s550_s23, %s551_s24  }
  0x11   : > { %p106_p11 = scmp.eq.s32.totalorder %s596_s19, 1  ;;  %p628_p12 = por %p41_p1, %p40_p10 }
  0x12   : > { %s624_s29 = scalar_select %p25_p8, %s543_s14, %s27_s27  }
  0x13   : > { %p632_p13 = por %p106_p11, %p34_p7  ;;  %p112_p0 = scmp.eq.s32.totalorder %s343_s25, 1 }
  0x14   : > { %p36_p2 = por %p35_p9, %p34_p7  ;;  %s149_s5 = sand.u32 1, %s543_s14  }
  0x15   : > { %p637_p4 = por %p112_p0, %p40_p10  ;;  %p378_p6 = scmp.lt.s32.totalorder %s547_s15, 2 }
  0x16   : > { %s347_s7 = sshll.u32 %s149_s5, 3  ;;  %s348_s8 = sshll.u32 %s547_s15, 3 }
  0x17   : > { %s157_s11 = scalar_lea.hbm %s718_s0, %s348_s8  ;;  %s153_s17 = scalar_lea.vmem [#allocation2], %s347_s7 }
  0x18   : > { %s159_s16 = sshll.u32 %s157_s11, 4  ;;  %s161_s18 = sshll.u32 %s153_s17, 4  ;;  %s160_s16 = int_to_ptr.hbm [resolvable:$true] %s159_s16  ;;  %s162_s18 = int_to_ptr.vmem [resolvable:$true] %s161_s18 }
  0x19   : > { %p646_p8 = pnand %p378_p6, %p36_p2  ;;  %s150_s22 = scalar_lea.sflag [#allocation3], %s149_s5 }
  0x1a   : > { %s447_s23 = sshra.s32 %s160_s16, 4  ;;  %s454_s28 = scalar_lea.hbm %s718_s0, 16  ;;  %s448_s23 = int_to_ptr.hbm [resolvable:$true] %s447_s23 }
  0x1b   : > { %s449_s24 = scalar_lea.hbm %s448_s23, 8  ;;  %p451_p9 = pneg %p646_p8 }
  0x1c   : > { %p450_p7 = scmp.ne.s32.totalorder %s448_s23, %s449_s24  ;;  %p455_p0 = scmp.lt.s32.totalorder %s448_s23, %s718_s0 }
  0x1d   : > { %p456_p2 = scmp.lt.s32.totalorder %s454_s28, %s449_s24 }
  0x1e   : > { %p452_p10 = pnand %p451_p9, %p450_p7 }
  0x1f   : > { %p457_p6 = por %p456_p2, %p455_p0 }
  0x20   : > { %p453_p11 = pneg %p452_p10 }
  0x22   : > { %p458_p5 = pnand %p457_p6, %p453_p11 }
  0x24   : > { %461 = shalt.err (!%p458_p5)
}
  0x25   : > { %372 = dma.hbm_to_vmem [thread:$0]  (!%p646_p8), %s160_s16, 128, %s162_s18, %s150_s22  }
  0x26   : > { %170 = sbr.rel (%p601_p3) target bundleno = 209 (0xd1), region = 32  ;;  %s663_s5 = sand.u32 (!%p601_p3), 1, %s539_s13  }
  0x27   : > { %s350_s9 = sshll.u32 (!%p601_p3), %s663_s5, 3  ;;  %s173_s10 = scalar_lea.sflag (!%p601_p3), [#allocation3], %s663_s5 }
  0x28   : > { %s669_s11 = scalar_lea.vmem (!%p601_p3), [#allocation2], %s350_s9 }
  0x2b   : > { %522 = dma.done.wait (%p628_p12), %s173_s10, 128  }
  0x2c   : > { %524 = vsyncadd (%p628_p12), %s173_s10, 4294967168 }
  0x2d   : > { %526 = dma.done.wait (%p41_p1), [#allocation6], 2048  }
  0x2e   : > { %528 = vsyncadd (%p41_p1), [#allocation6], 4294965248  ;;  %v221_v0 = vld [vmem:[#allocation5 + $0x78] sm:$0xff]  ;;  %v220_v1 = vld [vmem:[#allocation5 + $0x70] sm:$0xff]  ;;  %s354_s20 = sshll.u32 %s596_s19, 3  ;;  %s204_s22 = scalar_lea.vmem [#allocation7], %s350_s9 }
  0x2f   : > { %226 = vmatpush.msra.mxu0 %v221_v0  ;;  %v219_v2 = vld [vmem:[#allocation5 + $0x68] sm:$0xff]  ;;  %v218_v3 = vld [vmem:[#allocation5 + $0x60] sm:$0xff]  ;;  %v217_v4 = vld [vmem:[#allocation5 + $0x58] sm:$0xff]  ;;  %s258_s17 = scalar_lea.hbm %s721_s3, %s354_s20  ;;  %s260_s23 = sshll.u32 %s204_s22, 4  ;;  %s261_s23 = int_to_ptr.vmem [resolvable:$true] %s260_s23 }
  0x30   : > { %v216_v5 = vld [vmem:[#allocation5 + $0x50] sm:$0xff]  ;;  %v215_v6 = vld [vmem:[#allocation5 + $0x48] sm:$0xff]  ;;  %v214_v7 = vld [vmem:[#allocation5 + $0x40] sm:$0xff]  ;;  %s262_s24 = sshll.u32 %s258_s17, 4  ;;  %s248_s25 = scalar_lea.sflag [#allocation4], %s663_s5  ;;  %s263_s24 = int_to_ptr.hbm [resolvable:$true] %s262_s24 }
  0x31   : > { %227 = vmatpush.msra.mxu0 %v220_v1  ;;  %v213_v8 = vld [vmem:[#allocation5 + $0x38] sm:$0xff]  ;;  %v212_v9 = vld [vmem:[#allocation5 + $0x30] sm:$0xff]  ;;  %v211_v10 = vld [vmem:[#allocation5 + $0x28] sm:$0xff]  ;;  %s491_s19 = sshra.s32 %s263_s24, 4  ;;  %s497_s8 = scalar_lea.hbm %s721_s3, 16  ;;  %s492_s19 = int_to_ptr.hbm [resolvable:$true] %s491_s19 }
  0x32   : > { %v210_v11 = vld [vmem:[#allocation5 + $0x20] sm:$0xff]  ;;  %v209_v12 = vld [vmem:[#allocation5 + $0x18] sm:$0xff]  ;;  %v208_v13 = vld [vmem:[#allocation5 + $0x10] sm:$0xff]  ;;  %s493_s27 = scalar_lea.hbm %s492_s19, 8  ;;  %p498_p12 = scmp.lt.s32.totalorder %s492_s19, %s721_s3 }
  0x33   : > { %228 = vmatpush.msra.mxu0 %v219_v2  ;;  %v207_v14 = vld [vmem:[#allocation5 + $0x8] sm:$0xff]  ;;  %v206_v15 = vld [vmem:[#allocation5] sm:$0xff]  ;;  %v205_v16 = vld [vmem:[%s669_s11] sm:$0xff]  ;;  %p494_p1 = scmp.ne.s32.totalorder %s492_s19, %s493_s27  ;;  %p499_p8 = scmp.lt.s32.totalorder %s497_s8, %s493_s27 }
  0x34   : > { %v416_v17 = vld [vmem:[%s720_s2] ss:$0 sm:$0xff] }
  0x35   : > { %229 = vmatpush.msra.mxu0 %v218_v3  ;;  %p495_p3 = pnand %p494_p1, %p632_p13  ;;  %p500_p7 = por %p499_p8, %p498_p12 }
  0x37   : > { %230 = vmatpush.msra.mxu0 %v217_v4  ;;  %p496_p5 = pneg %p495_p3 }
  0x39   : > { %231 = vmatpush.msra.mxu0 %v216_v5  ;;  %p501_p9 = pnand %p500_p7, %p496_p5 }
  0x3b   : > { %232 = vmatpush.msra.mxu0 %v215_v6 }
  0x3d   : > { %233 = vmatpush.msra.mxu0 %v214_v7 }
  0x3f   : > { %234 = vmatpush.msra.mxu0 %v213_v8 }
  0x41   : > { %235 = vmatpush.msra.mxu0 %v212_v9 }
  0x43   : > { %236 = vmatpush.msra.mxu0 %v211_v10 }
  0x45   : > { %237 = vmatpush.msra.mxu0 %v210_v11 }
  0x47   : > { %238 = vmatpush.msra.mxu0 %v209_v12 }
  0x49   : > { %239 = vmatpush.msra.mxu0 %v208_v13 }
  0x4b   : > { %240 = vmatpush.msra.mxu0 %v207_v14 }
  0x4d   : > { %241 = vmatpush.msra.mxu0 %v206_v15 }
  0x4e   : > { %242 = vmatmul.f32.vlgmr.msra.gmra.mxu0 %v205_v16 }
  0xcb   : > { %v243_v18 = vpop.f32.mrf.mxu0 }
  0xcc   : > { %v244_v19 = vadd.f32 %v416_v17, %v243_v18 }
  0xce   : > { %246 = vst [vmem:[%s204_s22] sm:$0xff] %v244_v19 }
  0xcf   : > { %504 = shalt.err (!%p501_p9)
}
  0xd0   : > { %363 = dma.vmem_to_hbm [thread:$0]  (%p632_p13), %s261_s23, 128, %s263_s24, %s248_s25  }
  0xd1 PF: > { %s274_s5 = sand.u32 1, %s535_s12   ;;  %p727_p10 = scmp.ge.s32.totalorder %s547_s15, 2 }
  0xd2   : > { %s275_s11 = scalar_lea.sflag [#allocation4], %s274_s5 }
  0xd3   : > { %p374_p11 = pnand %p727_p10, %p637_p4 }
  0xd5   : > { %p375_p0 = pneg %p374_p11 }
  0xd7   : > { %530 = dma.done.wait (%p375_p0), %s275_s11, 128  }
  0xd8   : > { %532 = vsyncadd (%p375_p0), %s275_s11, 4294967168  ;;  %p17_p2 = scmp.ge.s32.totalorder %s612_s26, 4   ;;  %s728_s12 = smov %s539_s13 }
  0xd9   : > { %s729_s13 = smov %s543_s14  ;;  %s730_s14 = smov %s624_s29 }
  0xda   : > { %s731_s15 = smov %s612_s26  ;;  %19 = sbr.rel (!%p17_p2) target bundleno = 6 (0x6), region = 81 }
  0xdf   :  { %281 = vsyncpa [#allocation3], 1 }
  0xe0   :  { %283 = vsyncpa [#allocation3 + $0x1], 1 }
  0xe1   :  { %284 = vsyncpa [#allocation6], 1 }
  0xe2   :  { %285 = vsyncpa [#allocation4], 1 }
  0xe3   :  { %287 = vsyncpa [#allocation4 + $0x1], 1 }

</bundles_post_ra>
